<compile_context>
chip_gen: v6e
topology: v6e:2x2x1
jax: 0.10.0
libtpu: 0.0.40
codegen_flags: <defaults>
</compile_context>

<pallas_src>
import math
import functools

import jax
import jax.numpy as jnp
from jax.experimental import pallas as pl
from jax.experimental.pallas import tpu as pltpu

_LN_EPS = 1e-5    # nn.LayerNorm default
_RMS_EPS = 1e-5   # per-head sub-layer RMSNorm


# ----------------------------- tiling helpers -----------------------------

def _row_tile(n_rows, target=512):
    """Row tile over B*N (keep 512 for v7x VMEM budget; 1024 is fine on v5e/v6e)."""
    return n_rows if n_rows <= target else target


def _k_tile(total, target=1024):
    """Hidden-dim reduction tile; must divide `total` exactly (no K padding)."""
    if total <= target:
        return total
    t = (target // 128) * 128
    while t > 0 and total % t:
        t -= 128
    return t if t > 0 else total


# -------------------------------- kernels ---------------------------------

def _attn_block_kernel(num_heads, head_dim,
                       lam_ref, x_ref, wqkv_ref, wo_ref, g_ref,
                       ln_g_ref, ln_b_ref, x1_ref, x1bf_ref):
    """Fused: qkv proj + differential attention (all heads) + out_proj
    + residual + LayerNorm1 for one batch element.

    lam_ref : SMEM (2,) f32 = [lambda_full, 1 - lambda_init]
    x_ref   : (N, D) f32 input tokens (residual source)
    wqkv_ref: (D, 3D) bf16, grouped [Q1_all | Q2_all | K1_all | K2_all | V],
              1/sqrt(head_dim) pre-folded into the Q columns
    wo_ref  : (D, D) bf16 output projection
    g_ref   : (1, 2*head_dim) f32 per-head RMSNorm weight
    x1_ref  : (N, D) f32 output  (x + LN1(attn_out))
    x1bf_ref: (N, D) bf16 copy of the same (MLP matmul operand)
    """
    D = num_heads * 2 * head_dim
    Dh = num_heads * head_dim          # width of each Q/K group
    lam_full = lam_ref[0]
    post_scale = lam_ref[1]
    g = g_ref[...]

    x_f32 = x_ref[...]
    x_bf = x_f32.astype(jnp.bfloat16)

    # Single fused projection; result stays in registers/VMEM (never hits HBM).
    qkv = jnp.dot(x_bf, wqkv_ref[...], preferred_element_type=jnp.float32)
    qkv_bf = qkv.astype(jnp.bfloat16)                     # (N, 3D)

    dn = (((1,), (1,)), ((), ()))      # contract last dims: q @ k^T w/o transpose
    head_outs = []
    for h in range(num_heads):         # static unroll over heads
        c = h * head_dim
        q1 = qkv_bf[:, c:c + head_dim]
        q2 = qkv_bf[:, Dh + c:Dh + c + head_dim]
        k1 = qkv_bf[:, 2 * Dh + c:2 * Dh + c + head_dim]
        k2 = qkv_bf[:, 3 * Dh + c:3 * Dh + c + head_dim]
        v = qkv_bf[:, 2 * D + h * 2 * head_dim:2 * D + (h + 1) * 2 * head_dim]

        s1 = jax.lax.dot_general(q1, k1, dn, preferred_element_type=jnp.float32)
        s2 = jax.lax.dot_general(q2, k2, dn, preferred_element_type=jnp.float32)

        # softmax kept in f32; denominators via EUP reciprocal
        e1 = jnp.exp(s1 - jnp.max(s1, axis=-1, keepdims=True))
        a1 = e1 * pl.reciprocal(jnp.sum(e1, axis=-1, keepdims=True), approx=True)
        e2 = jnp.exp(s2 - jnp.max(s2, axis=-1, keepdims=True))
        a2 = e2 * pl.reciprocal(jnp.sum(e2, axis=-1, keepdims=True), approx=True)

        # Two PV matmuls combined in f32: keeps bf16 MXU operands without
        # forming the cancellation-sensitive (a1 - lambda*a2) in bf16.
        pv1 = jnp.dot(a1.astype(jnp.bfloat16), v, preferred_element_type=jnp.float32)
        pv2 = jnp.dot(a2.astype(jnp.bfloat16), v, preferred_element_type=jnp.float32)
        out = pv1 - lam_full * pv2                        # (N, 2*hd) f32

        # per-head sub-layer RMSNorm, then (1 - lambda_init) scale
        ms = jnp.mean(jnp.square(out), axis=-1, keepdims=True)
        out = out * jax.lax.rsqrt(ms + _RMS_EPS) * g
        head_outs.append((out * post_scale).astype(jnp.bfloat16))

    # Lane-dense head concat (one slab) -> fused out_proj + residual + LN1.
    attn_all = jnp.concatenate(head_outs, axis=-1)        # (N, D) bf16
    proj = jnp.dot(attn_all, wo_ref[...], preferred_element_type=jnp.float32)
    mu = jnp.mean(proj, axis=-1, keepdims=True)
    var = jnp.mean(jnp.square(proj - mu), axis=-1, keepdims=True)
    pn = (proj - mu) * jax.lax.rsqrt(var + _LN_EPS)
    x1 = x_f32 + pn * ln_g_ref[...] + ln_b_ref[...]

    x1_ref[...] = x1
    x1bf_ref[...] = x1.astype(jnp.bfloat16)


def _mlp_add_ln_kernel(xb_ref, xf_ref, w1_ref, b1_ref, w2_ref, b2_ref,
                       g_ref, bln_ref, o_ref, acc_ref):
    """out = x1 + LayerNorm(fc2(gelu(fc1(x1)))); hidden dim tiled over grid axis 1."""
    k = pl.program_id(1)

    @pl.when(k == 0)
    def _():
        acc_ref[...] = jnp.zeros_like(acc_ref)

    h = jnp.dot(xb_ref[...], w1_ref[...],
                preferred_element_type=jnp.float32) + b1_ref[...]
    h = jax.nn.gelu(h, approximate=False)                 # exact GELU == nn.GELU()
    acc_ref[...] += jnp.dot(h.astype(jnp.bfloat16), w2_ref[...],
                            preferred_element_type=jnp.float32)

    @pl.when(k == pl.num_programs(1) - 1)
    def _():
        y = acc_ref[...] + b2_ref[...]
        mu = jnp.mean(y, axis=-1, keepdims=True)
        var = jnp.mean(jnp.square(y - mu), axis=-1, keepdims=True)
        yn = (y - mu) * jax.lax.rsqrt(var + _LN_EPS)
        o_ref[...] = xf_ref[...] + yn * g_ref[...] + bln_ref[...]


# ----------------------- one-time weight preprocessing ----------------------

def prepare_block_params(p):
    """Hoisted weight preprocessing: regroup + fold scale + bf16 casts + lambda."""
    D = p["wq"].shape[0]
    H = int(p["num_heads"])
    hd = D // H // 2
    scale = 1.0 / math.sqrt(hd)

    def split_groups(w):
        # PyTorch-style layout per head: [.. | q1_h (hd) | q2_h (hd) | ..]
        w4 = w.reshape(D, H, 2, hd)
        g1 = w4[:, :, 0, :].reshape(D, H * hd)
        g2 = w4[:, :, 1, :].reshape(D, H * hd)
        return g1, g2

    q1g, q2g = split_groups(p["wq"])
    k1g, k2g = split_groups(p["wk"])
    # Grouped fused weight: [Q1_all | Q2_all | K1_all | K2_all | V]; q pre-scaled.
    wqkv = jnp.concatenate(
        [q1g * scale, q2g * scale, k1g, k2g, p["wv"]], axis=1).astype(jnp.bfloat16)

    lambda_1 = jnp.exp(jnp.sum(p["lambda_q1"] * p["lambda_k1"]))
    lambda_2 = jnp.exp(jnp.sum(p["lambda_q2"] * p["lambda_k2"]))
    lambda_full = lambda_1 - lambda_2 + p["lambda_init"]
    lam = jnp.stack(
        [lambda_full, jnp.asarray(1.0 - p["lambda_init"], jnp.float32)]
    ).astype(jnp.float32)

    hidden = p["w1"].shape[1]
    return dict(
        num_heads=H, head_dim=hd, hidden=hidden,
        lam=lam,
        wqkv=wqkv,
        wo=p["wo"].astype(jnp.bfloat16),
        gamma=p["subln_gamma"].reshape(1, 2 * hd).astype(jnp.float32),
        ln1_g=p["ln1_g"].reshape(1, D).astype(jnp.float32),
        ln1_b=p["ln1_b"].reshape(1, D).astype(jnp.float32),
        w1=p["w1"].astype(jnp.bfloat16),
        b1=p["b1"].reshape(1, hidden).astype(jnp.float32),
        w2=p["w2"].astype(jnp.bfloat16),
        b2=p["b2"].reshape(1, D).astype(jnp.float32),
        ln2_g=p["ln2_g"].reshape(1, D).astype(jnp.float32),
        ln2_b=p["ln2_b"].reshape(1, D).astype(jnp.float32),
    )


# ------------------------------ forward pass ------------------------------

def diff_attn_transformer_block(x, prep):
    """x = x + norm1(diff_attn(x)); return x + norm2(mlp(x))"""
    B, N, D = x.shape
    H = prep["num_heads"]
    hd = prep["head_dim"]
    BN = B * N
    x_f32 = x.astype(jnp.float32)

    # ---- fused: qkv proj + diff-attention + out_proj + residual + LN1 ----
    x1_f32, x1_bf = pl.pallas_call(
        functools.partial(_attn_block_kernel, H, hd),
        out_shape=(jax.ShapeDtypeStruct((B, N, D), jnp.float32),
                   jax.ShapeDtypeStruct((B, N, D), jnp.bfloat16)),
        grid=(B,),
        in_specs=[
            pl.BlockSpec(memory_space=pltpu.MemorySpace.SMEM),         # lam scalars
            pl.BlockSpec((None, N, D), lambda b: (b, 0, 0)),           # x (tokens)
            pl.BlockSpec((D, 3 * D), lambda b: (0, 0)),                # fused qkv W
            pl.BlockSpec((D, D), lambda b: (0, 0)),                    # Wo
            pl.BlockSpec((1, 2 * hd), lambda b: (0, 0)),               # RMSNorm gamma
            pl.BlockSpec((1, D), lambda b: (0, 0)),                    # ln1 gamma
            pl.BlockSpec((1, D), lambda b: (0, 0)),                    # ln1 beta
        ],
        out_specs=(pl.BlockSpec((None, N, D), lambda b: (b, 0, 0)),
                   pl.BlockSpec((None, N, D), lambda b: (b, 0, 0))),
        compiler_params=pltpu.CompilerParams(dimension_semantics=("parallel",)),
    )(prep["lam"], x_f32, prep["wqkv"], prep["wo"], prep["gamma"],
      prep["ln1_g"], prep["ln1_b"])

    x1f = x1_f32.reshape(BN, D)        # metadata-only reshapes
    x1b = x1_bf.reshape(BN, D)

    # ---- fused: MLP (hidden-tiled) + residual + LN2 ----
    hidden = prep["hidden"]
    tm = _row_tile(BN)
    n_row = pl.cdiv(BN, tm)
    th = _k_tile(hidden)
    n_k = hidden // th

    out = pl.pallas_call(
        _mlp_add_ln_kernel,
        out_shape=jax.ShapeDtypeStruct((BN, D), jnp.float32),
        grid=(n_row, n_k),
        in_specs=[
            pl.BlockSpec((tm, D), lambda i, k: (i, 0)),    # x1 bf16 (matmul operand)
            pl.BlockSpec((tm, D), lambda i, k: (i, 0)),    # x1 f32 (residual)
            pl.BlockSpec((D, th), lambda i, k: (0, k)),    # W1 hidden-column tile
            pl.BlockSpec((1, th), lambda i, k: (0, k)),    # b1 tile
            pl.BlockSpec((th, D), lambda i, k: (k, 0)),    # W2 hidden-row tile
            pl.BlockSpec((1, D), lambda i, k: (0, 0)),     # b2
            pl.BlockSpec((1, D), lambda i, k: (0, 0)),     # ln2 gamma
            pl.BlockSpec((1, D), lambda i, k: (0, 0)),     # ln2 beta
        ],
        out_specs=pl.BlockSpec((tm, D), lambda i, k: (i, 0)),
        scratch_shapes=[pltpu.VMEM((tm, D), jnp.float32)],
        compiler_params=pltpu.CompilerParams(
            dimension_semantics=("parallel", "arbitrary")),
    )(x1b, x1f, prep["w1"], prep["b1"], prep["w2"], prep["b2"],
      prep["ln2_g"], prep["ln2_b"])

    return out.reshape(B, N, D)


# ----------------------------- parameter setup -----------------------------

def init_params(key, dim, num_heads, layer_num, expansion_factor=4):
    hd = dim // num_heads // 2
    hidden = int(expansion_factor * dim)
    ks = jax.random.split(key, 10)

    def w(k, shape, scale=0.02):
        return (scale * jax.random.normal(k, shape)).astype(jnp.float32)

    lambda_init = 0.8 - 0.6 * math.exp(-0.3 * (layer_num - 1))
    return dict(
        num_heads=num_heads,
        # attention projections (stored as (in, out) == PyTorch weight.T), bias-free
        wq=w(ks[0], (dim, dim)), wk=w(ks[1], (dim, dim)),
        wv=w(ks[2], (dim, dim)), wo=w(ks[3], (dim, dim)),
        lambda_q1=w(ks[4], (hd,), 0.1), lambda_k1=w(ks[5], (hd,), 0.1),
        lambda_q2=w(ks[6], (hd,), 0.1), lambda_k2=w(ks[7], (hd,), 0.1),
        lambda_init=float(lambda_init),
        subln_gamma=jnp.ones((2 * hd,), jnp.float32),
        # MLP
        w1=w(ks[8], (dim, hidden)), b1=jnp.zeros((hidden,), jnp.float32),
        w2=w(ks[9], (hidden, dim)), b2=jnp.zeros((dim,), jnp.float32),
        # LayerNorms
        ln1_g=jnp.ones((dim,), jnp.float32), ln1_b=jnp.zeros((dim,), jnp.float32),
        ln2_g=jnp.ones((dim,), jnp.float32), ln2_b=jnp.zeros((dim,), jnp.float32),
    )


if __name__ == "__main__":
    dim, num_heads, layer_num = 32, 2, 1
    B, N = 2, 16

    key = jax.random.PRNGKey(0)
    pkey, xkey = jax.random.split(key)
    params = init_params(pkey, dim, num_heads, layer_num)
    prep = prepare_block_params(params)          # one-time weight preprocessing
    x = jax.random.normal(xkey, (B, N, dim), dtype=jnp.float32)

    y = diff_attn_transformer_block(x, prep)
    jax.block_until_ready(y)
    assert y.shape == (B, N, dim) and y.dtype == jnp.float32
    assert bool(jnp.all(jnp.isfinite(y)))
    print("KERNEL_OK")
</pallas_src>

<mosaic_0001>
module attributes {stable_mosaic.version = 11 : i64} {
  func.func @_attn_block_kernel(%arg0: i32, %arg1: memref<2xf32, #tpu.memory_space<smem>>, %arg2: memref<1x16x32xf32, #tpu.memory_space<vmem>>, %arg3: memref<32x96xbf16, #tpu.memory_space<vmem>>, %arg4: memref<32x32xbf16, #tpu.memory_space<vmem>>, %arg5: memref<1x16xf32, #tpu.memory_space<vmem>>, %arg6: memref<1x32xf32, #tpu.memory_space<vmem>>, %arg7: memref<1x32xf32, #tpu.memory_space<vmem>>, %arg8: memref<1x16x32xf32, #tpu.memory_space<vmem>>, %arg9: memref<1x16x32xbf16, #tpu.memory_space<vmem>>) attributes {dimension_semantics = [#tpu.dimension_semantics<parallel>], iteration_bounds = array<i64: 2>, scalar_prefetch = 0 : i64, scratch_operands = 0 : i64, tpu.core_type = #tpu.core_type<tc>, window_params = [{transform_indices = @transform_0, window_bounds = array<i64: 2>}, {transform_indices = @transform_1, window_bounds = array<i64: 1, 16, 32>}, {pipeline_mode = #tpu.pipeline_mode<synchronous>, transform_indices = @transform_2, window_bounds = array<i64: 32, 96>}, {pipeline_mode = #tpu.pipeline_mode<synchronous>, transform_indices = @transform_3, window_bounds = array<i64: 32, 32>}, {pipeline_mode = #tpu.pipeline_mode<synchronous>, transform_indices = @transform_4, window_bounds = array<i64: 1, 16>}, {pipeline_mode = #tpu.pipeline_mode<synchronous>, transform_indices = @transform_5, window_bounds = array<i64: 1, 32>}, {pipeline_mode = #tpu.pipeline_mode<synchronous>, transform_indices = @transform_6, window_bounds = array<i64: 1, 32>}, {transform_indices = @transform_7, window_bounds = array<i64: 1, 16, 32>}, {transform_indices = @transform_8, window_bounds = array<i64: 1, 16, 32>}]} {
    %c0 = arith.constant 0 : index
    %0 = memref.load %arg1[%c0] : memref<2xf32, #tpu.memory_space<smem>>
    %c1 = arith.constant 1 : index
    %1 = memref.load %arg1[%c1] : memref<2xf32, #tpu.memory_space<smem>>
    %c0_0 = arith.constant 0 : index
    %c0_1 = arith.constant 0 : index
    %2 = vector.load %arg5[%c0_0, %c0_1] : memref<1x16xf32, #tpu.memory_space<vmem>>, vector<1x16xf32>
    %c0_2 = arith.constant 0 : index
    %c0_3 = arith.constant 0 : index
    %c0_4 = arith.constant 0 : index
    %3 = vector.load %arg2[%c0_2, %c0_3, %c0_4] : memref<1x16x32xf32, #tpu.memory_space<vmem>>, vector<1x16x32xf32>
    %4 = vector.shape_cast %3 : vector<1x16x32xf32> to vector<16x32xf32>
    %5 = arith.truncf %4 : vector<16x32xf32> to vector<16x32xbf16>
    %c0_5 = arith.constant 0 : index
    %c0_6 = arith.constant 0 : index
    %6 = vector.load %arg3[%c0_5, %c0_6] : memref<32x96xbf16, #tpu.memory_space<vmem>>, vector<32x96xbf16>
    %cst = arith.constant dense<0.000000e+00> : vector<16x96xf32>
    %7 = tpu.matmul %5, %6, %cst {dimension_numbers = #tpu.dot_dimension_numbers<[1], [0], [0], [1], [0, 0, 1, 1], [], []>} : vector<16x32xbf16>, vector<32x96xbf16>, vector<16x96xf32> -> vector<16x96xf32>
    %8 = arith.truncf %7 : vector<16x96xf32> to vector<16x96xbf16>
    %9 = vector.extract_strided_slice %8 {offsets = [0, 0], sizes = [16, 8], strides = [1, 1]} : vector<16x96xbf16> to vector<16x8xbf16>
    %10 = vector.extract_strided_slice %8 {offsets = [0, 16], sizes = [16, 8], strides = [1, 1]} : vector<16x96xbf16> to vector<16x8xbf16>
    %11 = vector.extract_strided_slice %8 {offsets = [0, 32], sizes = [16, 8], strides = [1, 1]} : vector<16x96xbf16> to vector<16x8xbf16>
    %12 = vector.extract_strided_slice %8 {offsets = [0, 48], sizes = [16, 8], strides = [1, 1]} : vector<16x96xbf16> to vector<16x8xbf16>
    %13 = vector.extract_strided_slice %8 {offsets = [0, 64], sizes = [16, 16], strides = [1, 1]} : vector<16x96xbf16> to vector<16x16xbf16>
    %cst_7 = arith.constant dense<0.000000e+00> : vector<16x16xf32>
    %14 = tpu.matmul %9, %11, %cst_7 {dimension_numbers = #tpu.dot_dimension_numbers<[1], [1], [0], [0], [0, 0, 1, 0], [], []>} : vector<16x8xbf16>, vector<16x8xbf16>, vector<16x16xf32> -> vector<16x16xf32>
    %cst_8 = arith.constant dense<0.000000e+00> : vector<16x16xf32>
    %15 = tpu.matmul %10, %12, %cst_8 {dimension_numbers = #tpu.dot_dimension_numbers<[1], [1], [0], [0], [0, 0, 1, 0], [], []>} : vector<16x8xbf16>, vector<16x8xbf16>, vector<16x16xf32> -> vector<16x16xf32>
    %cst_9 = arith.constant dense<0xFF800000> : vector<16xf32>
    %16 = vector.multi_reduction <maximumf>, %14, %cst_9 [1] : vector<16x16xf32> to vector<16xf32>
    %17 = vector.shape_cast %16 : vector<16xf32> to vector<16x1xf32>
    %18 = vector.broadcast %17 : vector<16x1xf32> to vector<16x16xf32>
    %19 = arith.subf %14, %18 : vector<16x16xf32>
    %20 = math.exp %19 : vector<16x16xf32>
    %cst_10 = arith.constant dense<0.000000e+00> : vector<16xf32>
    %21 = vector.multi_reduction <add>, %20, %cst_10 [1] : vector<16x16xf32> to vector<16xf32>
    %22 = vector.shape_cast %21 : vector<16xf32> to vector<16x1xf32>
    %23 = tpu.reciprocal %22 {approx = true} : vector<16x1xf32> -> vector<16x1xf32>
    %24 = vector.broadcast %23 : vector<16x1xf32> to vector<16x16xf32>
    %25 = arith.mulf %20, %24 : vector<16x16xf32>
    %cst_11 = arith.constant dense<0xFF800000> : vector<16xf32>
    %26 = vector.multi_reduction <maximumf>, %15, %cst_11 [1] : vector<16x16xf32> to vector<16xf32>
    %27 = vector.shape_cast %26 : vector<16xf32> to vector<16x1xf32>
    %28 = vector.broadcast %27 : vector<16x1xf32> to vector<16x16xf32>
    %29 = arith.subf %15, %28 : vector<16x16xf32>
    %30 = math.exp %29 : vector<16x16xf32>
    %cst_12 = arith.constant dense<0.000000e+00> : vector<16xf32>
    %31 = vector.multi_reduction <add>, %30, %cst_12 [1] : vector<16x16xf32> to vector<16xf32>
    %32 = vector.shape_cast %31 : vector<16xf32> to vector<16x1xf32>
    %33 = tpu.reciprocal %32 {approx = true} : vector<16x1xf32> -> vector<16x1xf32>
    %34 = vector.broadcast %33 : vector<16x1xf32> to vector<16x16xf32>
    %35 = arith.mulf %30, %34 : vector<16x16xf32>
    %36 = arith.truncf %25 : vector<16x16xf32> to vector<16x16xbf16>
    %cst_13 = arith.constant dense<0.000000e+00> : vector<16x16xf32>
    %37 = tpu.matmul %36, %13, %cst_13 {dimension_numbers = #tpu.dot_dimension_numbers<[1], [0], [0], [1], [0, 0, 1, 1], [], []>} : vector<16x16xbf16>, vector<16x16xbf16>, vector<16x16xf32> -> vector<16x16xf32>
    %38 = arith.truncf %35 : vector<16x16xf32> to vector<16x16xbf16>
    %cst_14 = arith.constant dense<0.000000e+00> : vector<16x16xf32>
    %39 = tpu.matmul %38, %13, %cst_14 {dimension_numbers = #tpu.dot_dimension_numbers<[1], [0], [0], [1], [0, 0, 1, 1], [], []>} : vector<16x16xbf16>, vector<16x16xbf16>, vector<16x16xf32> -> vector<16x16xf32>
    %40 = vector.broadcast %0 : f32 to vector<16x16xf32>
    %41 = arith.mulf %40, %39 : vector<16x16xf32>
    %42 = arith.subf %37, %41 : vector<16x16xf32>
    %43 = arith.mulf %42, %42 : vector<16x16xf32>
    %cst_15 = arith.constant dense<0.000000e+00> : vector<16xf32>
    %44 = vector.multi_reduction <add>, %43, %cst_15 [1] : vector<16x16xf32> to vector<16xf32>
    %45 = vector.shape_cast %44 : vector<16xf32> to vector<16x1xf32>
    %cst_16 = arith.constant 1.600000e+01 : f32
    %46 = vector.broadcast %cst_16 : f32 to vector<16x1xf32>
    %47 = arith.divf %45, %46 : vector<16x1xf32>
    %cst_17 = arith.constant 9.99999974E-6 : f32
    %48 = vector.broadcast %cst_17 : f32 to vector<16x1xf32>
    %49 = arith.addf %47, %48 : vector<16x1xf32>
    %50 = math.rsqrt %49 : vector<16x1xf32>
    %51 = vector.broadcast %50 : vector<16x1xf32> to vector<16x16xf32>
    %52 = arith.mulf %42, %51 : vector<16x16xf32>
    %53 = vector.broadcast %2 : vector<1x16xf32> to vector<16x16xf32>
    %54 = arith.mulf %52, %53 : vector<16x16xf32>
    %55 = vector.broadcast %1 : f32 to vector<16x16xf32>
    %56 = arith.mulf %54, %55 : vector<16x16xf32>
    %57 = arith.truncf %56 : vector<16x16xf32> to vector<16x16xbf16>
    %58 = vector.extract_strided_slice %8 {offsets = [0, 8], sizes = [16, 8], strides = [1, 1]} : vector<16x96xbf16> to vector<16x8xbf16>
    %59 = vector.extract_strided_slice %8 {offsets = [0, 24], sizes = [16, 8], strides = [1, 1]} : vector<16x96xbf16> to vector<16x8xbf16>
    %60 = vector.extract_strided_slice %8 {offsets = [0, 40], sizes = [16, 8], strides = [1, 1]} : vector<16x96xbf16> to vector<16x8xbf16>
    %61 = vector.extract_strided_slice %8 {offsets = [0, 56], sizes = [16, 8], strides = [1, 1]} : vector<16x96xbf16> to vector<16x8xbf16>
    %62 = vector.extract_strided_slice %8 {offsets = [0, 80], sizes = [16, 16], strides = [1, 1]} : vector<16x96xbf16> to vector<16x16xbf16>
    %cst_18 = arith.constant dense<0.000000e+00> : vector<16x16xf32>
    %63 = tpu.matmul %58, %60, %cst_18 {dimension_numbers = #tpu.dot_dimension_numbers<[1], [1], [0], [0], [0, 0, 1, 0], [], []>} : vector<16x8xbf16>, vector<16x8xbf16>, vector<16x16xf32> -> vector<16x16xf32>
    %cst_19 = arith.constant dense<0.000000e+00> : vector<16x16xf32>
    %64 = tpu.matmul %59, %61, %cst_19 {dimension_numbers = #tpu.dot_dimension_numbers<[1], [1], [0], [0], [0, 0, 1, 0], [], []>} : vector<16x8xbf16>, vector<16x8xbf16>, vector<16x16xf32> -> vector<16x16xf32>
    %cst_20 = arith.constant dense<0xFF800000> : vector<16xf32>
    %65 = vector.multi_reduction <maximumf>, %63, %cst_20 [1] : vector<16x16xf32> to vector<16xf32>
    %66 = vector.shape_cast %65 : vector<16xf32> to vector<16x1xf32>
    %67 = vector.broadcast %66 : vector<16x1xf32> to vector<16x16xf32>
    %68 = arith.subf %63, %67 : vector<16x16xf32>
    %69 = math.exp %68 : vector<16x16xf32>
    %cst_21 = arith.constant dense<0.000000e+00> : vector<16xf32>
    %70 = vector.multi_reduction <add>, %69, %cst_21 [1] : vector<16x16xf32> to vector<16xf32>
    %71 = vector.shape_cast %70 : vector<16xf32> to vector<16x1xf32>
    %72 = tpu.reciprocal %71 {approx = true} : vector<16x1xf32> -> vector<16x1xf32>
    %73 = vector.broadcast %72 : vector<16x1xf32> to vector<16x16xf32>
    %74 = arith.mulf %69, %73 : vector<16x16xf32>
    %cst_22 = arith.constant dense<0xFF800000> : vector<16xf32>
    %75 = vector.multi_reduction <maximumf>, %64, %cst_22 [1] : vector<16x16xf32> to vector<16xf32>
    %76 = vector.shape_cast %75 : vector<16xf32> to vector<16x1xf32>
    %77 = vector.broadcast %76 : vector<16x1xf32> to vector<16x16xf32>
    %78 = arith.subf %64, %77 : vector<16x16xf32>
    %79 = math.exp %78 : vector<16x16xf32>
    %cst_23 = arith.constant dense<0.000000e+00> : vector<16xf32>
    %80 = vector.multi_reduction <add>, %79, %cst_23 [1] : vector<16x16xf32> to vector<16xf32>
    %81 = vector.shape_cast %80 : vector<16xf32> to vector<16x1xf32>
    %82 = tpu.reciprocal %81 {approx = true} : vector<16x1xf32> -> vector<16x1xf32>
    %83 = vector.broadcast %82 : vector<16x1xf32> to vector<16x16xf32>
    %84 = arith.mulf %79, %83 : vector<16x16xf32>
    %85 = arith.truncf %74 : vector<16x16xf32> to vector<16x16xbf16>
    %cst_24 = arith.constant dense<0.000000e+00> : vector<16x16xf32>
    %86 = tpu.matmul %85, %62, %cst_24 {dimension_numbers = #tpu.dot_dimension_numbers<[1], [0], [0], [1], [0, 0, 1, 1], [], []>} : vector<16x16xbf16>, vector<16x16xbf16>, vector<16x16xf32> -> vector<16x16xf32>
    %87 = arith.truncf %84 : vector<16x16xf32> to vector<16x16xbf16>
    %cst_25 = arith.constant dense<0.000000e+00> : vector<16x16xf32>
    %88 = tpu.matmul %87, %62, %cst_25 {dimension_numbers = #tpu.dot_dimension_numbers<[1], [0], [0], [1], [0, 0, 1, 1], [], []>} : vector<16x16xbf16>, vector<16x16xbf16>, vector<16x16xf32> -> vector<16x16xf32>
    %89 = vector.broadcast %0 : f32 to vector<16x16xf32>
    %90 = arith.mulf %89, %88 : vector<16x16xf32>
    %91 = arith.subf %86, %90 : vector<16x16xf32>
    %92 = arith.mulf %91, %91 : vector<16x16xf32>
    %cst_26 = arith.constant dense<0.000000e+00> : vector<16xf32>
    %93 = vector.multi_reduction <add>, %92, %cst_26 [1] : vector<16x16xf32> to vector<16xf32>
    %94 = vector.shape_cast %93 : vector<16xf32> to vector<16x1xf32>
    %cst_27 = arith.constant 1.600000e+01 : f32
    %95 = vector.broadcast %cst_27 : f32 to vector<16x1xf32>
    %96 = arith.divf %94, %95 : vector<16x1xf32>
    %cst_28 = arith.constant 9.99999974E-6 : f32
    %97 = vector.broadcast %cst_28 : f32 to vector<16x1xf32>
    %98 = arith.addf %96, %97 : vector<16x1xf32>
    %99 = math.rsqrt %98 : vector<16x1xf32>
    %100 = vector.broadcast %99 : vector<16x1xf32> to vector<16x16xf32>
    %101 = arith.mulf %91, %100 : vector<16x16xf32>
    %102 = vector.broadcast %2 : vector<1x16xf32> to vector<16x16xf32>
    %103 = arith.mulf %101, %102 : vector<16x16xf32>
    %104 = vector.broadcast %1 : f32 to vector<16x16xf32>
    %105 = arith.mulf %103, %104 : vector<16x16xf32>
    %106 = arith.truncf %105 : vector<16x16xf32> to vector<16x16xbf16>
    %107 = tpu.concatenate %57, %106 in 1 : vector<16x16xbf16>, vector<16x16xbf16> -> vector<16x32xbf16>
    %c0_29 = arith.constant 0 : index
    %c0_30 = arith.constant 0 : index
    %108 = vector.load %arg4[%c0_29, %c0_30] : memref<32x32xbf16, #tpu.memory_space<vmem>>, vector<32x32xbf16>
    %cst_31 = arith.constant dense<0.000000e+00> : vector<16x32xf32>
    %109 = tpu.matmul %107, %108, %cst_31 {dimension_numbers = #tpu.dot_dimension_numbers<[1], [0], [0], [1], [0, 0, 1, 1], [], []>} : vector<16x32xbf16>, vector<32x32xbf16>, vector<16x32xf32> -> vector<16x32xf32>
    %cst_32 = arith.constant dense<0.000000e+00> : vector<16xf32>
    %110 = vector.multi_reduction <add>, %109, %cst_32 [1] : vector<16x32xf32> to vector<16xf32>
    %111 = vector.shape_cast %110 : vector<16xf32> to vector<16x1xf32>
    %cst_33 = arith.constant 3.200000e+01 : f32
    %112 = vector.broadcast %cst_33 : f32 to vector<16x1xf32>
    %113 = arith.divf %111, %112 : vector<16x1xf32>
    %114 = vector.broadcast %113 : vector<16x1xf32> to vector<16x32xf32>
    %115 = arith.subf %109, %114 : vector<16x32xf32>
    %116 = arith.mulf %115, %115 : vector<16x32xf32>
    %cst_34 = arith.constant dense<0.000000e+00> : vector<16xf32>
    %117 = vector.multi_reduction <add>, %116, %cst_34 [1] : vector<16x32xf32> to vector<16xf32>
    %118 = vector.shape_cast %117 : vector<16xf32> to vector<16x1xf32>
    %cst_35 = arith.constant 3.200000e+01 : f32
    %119 = vector.broadcast %cst_35 : f32 to vector<16x1xf32>
    %120 = arith.divf %118, %119 : vector<16x1xf32>
    %121 = vector.broadcast %113 : vector<16x1xf32> to vector<16x32xf32>
    %122 = arith.subf %109, %121 : vector<16x32xf32>
    %cst_36 = arith.constant 9.99999974E-6 : f32
    %123 = vector.broadcast %cst_36 : f32 to vector<16x1xf32>
    %124 = arith.addf %120, %123 : vector<16x1xf32>
    %125 = math.rsqrt %124 : vector<16x1xf32>
    %126 = vector.broadcast %125 : vector<16x1xf32> to vector<16x32xf32>
    %127 = arith.mulf %122, %126 : vector<16x32xf32>
    %c0_37 = arith.constant 0 : index
    %c0_38 = arith.constant 0 : index
    %128 = vector.load %arg6[%c0_37, %c0_38] : memref<1x32xf32, #tpu.memory_space<vmem>>, vector<1x32xf32>
    %129 = vector.broadcast %128 : vector<1x32xf32> to vector<16x32xf32>
    %130 = arith.mulf %127, %129 : vector<16x32xf32>
    %131 = arith.addf %4, %130 : vector<16x32xf32>
    %c0_39 = arith.constant 0 : index
    %c0_40 = arith.constant 0 : index
    %132 = vector.load %arg7[%c0_39, %c0_40] : memref<1x32xf32, #tpu.memory_space<vmem>>, vector<1x32xf32>
    %133 = vector.broadcast %132 : vector<1x32xf32> to vector<16x32xf32>
    %134 = arith.addf %131, %133 : vector<16x32xf32>
    %c0_41 = arith.constant 0 : index
    %c0_42 = arith.constant 0 : index
    %c0_43 = arith.constant 0 : index
    %135 = vector.load %arg8[%c0_41, %c0_42, %c0_43] : memref<1x16x32xf32, #tpu.memory_space<vmem>>, vector<1x16x32xf32>
    %136 = vector.shape_cast %135 : vector<1x16x32xf32> to vector<16x32xf32>
    %137 = vector.shape_cast %134 : vector<16x32xf32> to vector<1x16x32xf32>
    tpu.vector_store %arg8[%c0_41, %c0_42, %c0_43], %137 {strides = array<i32>} : memref<1x16x32xf32, #tpu.memory_space<vmem>>, vector<1x16x32xf32>,
    %138 = arith.truncf %134 : vector<16x32xf32> to vector<16x32xbf16>
    %c0_44 = arith.constant 0 : index
    %c0_45 = arith.constant 0 : index
    %c0_46 = arith.constant 0 : index
    %139 = vector.load %arg9[%c0_44, %c0_45, %c0_46] : memref<1x16x32xbf16, #tpu.memory_space<vmem>>, vector<1x16x32xbf16>
    %140 = vector.shape_cast %139 : vector<1x16x32xbf16> to vector<16x32xbf16>
    %141 = vector.shape_cast %138 : vector<16x32xbf16> to vector<1x16x32xbf16>
    tpu.vector_store %arg9[%c0_44, %c0_45, %c0_46], %141 {strides = array<i32>} : memref<1x16x32xbf16, #tpu.memory_space<vmem>>, vector<1x16x32xbf16>,
    return
  }
  func.func @transform_0(%arg0: i32) -> i32 {
    %c0_i32 = arith.constant 0 : i32
    %c0_i32_0 = arith.constant 0 : i32
    return %c0_i32 : i32
  }
  func.func @transform_1(%arg0: i32) -> (i32, i32, i32) {
    %c0_i32 = arith.constant 0 : i32
    %c0_i32_0 = arith.constant 0 : i32
    %c0_i32_1 = arith.constant 0 : i32
    return %arg0, %c0_i32, %c0_i32_0 : i32, i32, i32
  }
  func.func @transform_2(%arg0: i32) -> (i32, i32) {
    %c0_i32 = arith.constant 0 : i32
    %c0_i32_0 = arith.constant 0 : i32
    %c0_i32_1 = arith.constant 0 : i32
    return %c0_i32, %c0_i32_0 : i32, i32
  }
  func.func @transform_3(%arg0: i32) -> (i32, i32) {
    %c0_i32 = arith.constant 0 : i32
    %c0_i32_0 = arith.constant 0 : i32
    %c0_i32_1 = arith.constant 0 : i32
    return %c0_i32, %c0_i32_0 : i32, i32
  }
  func.func @transform_4(%arg0: i32) -> (i32, i32) {
    %c0_i32 = arith.constant 0 : i32
    %c0_i32_0 = arith.constant 0 : i32
    %c0_i32_1 = arith.constant 0 : i32
    return %c0_i32, %c0_i32_0 : i32, i32
  }
  func.func @transform_5(%arg0: i32) -> (i32, i32) {
    %c0_i32 = arith.constant 0 : i32
    %c0_i32_0 = arith.constant 0 : i32
    %c0_i32_1 = arith.constant 0 : i32
    return %c0_i32, %c0_i32_0 : i32, i32
  }
  func.func @transform_6(%arg0: i32) -> (i32, i32) {
    %c0_i32 = arith.constant 0 : i32
    %c0_i32_0 = arith.constant 0 : i32
    %c0_i32_1 = arith.constant 0 : i32
    return %c0_i32, %c0_i32_0 : i32, i32
  }
  func.func @transform_7(%arg0: i32) -> (i32, i32, i32) {
    %c0_i32 = arith.constant 0 : i32
    %c0_i32_0 = arith.constant 0 : i32
    %c0_i32_1 = arith.constant 0 : i32
    return %arg0, %c0_i32, %c0_i32_0 : i32, i32, i32
  }
  func.func @transform_8(%arg0: i32) -> (i32, i32, i32) {
    %c0_i32 = arith.constant 0 : i32
    %c0_i32_0 = arith.constant 0 : i32
    %c0_i32_1 = arith.constant 0 : i32
    return %arg0, %c0_i32, %c0_i32_0 : i32, i32, i32
  }
}

</mosaic_0001>

<bundles_post_ra>
// kernel: tpu_custom_call.1
= control target key start
LH: loop header
LB: loop body
LE: loop exit
PB: predicated region body
PF: predicated region fallthrough
CT: control target
= control target key end

     0   :  { %s2189_s0 = inlined_call_operand.hbm [shape: f32[2], index: 0, kind: input, shape index: {}]   ;;  %s2190_s1 = inlined_call_operand.hbm [shape: f32[2,16,32], index: 1, kind: input, shape index: {}]   ;;  %s2191_s2 = inlined_call_operand.hbm [shape: bf16[32,96], index: 2, kind: input, shape index: {}]   ;;  %s2192_s3 = inlined_call_operand.hbm [shape: bf16[32,32], index: 3, kind: input, shape index: {}]   ;;  %s2193_s4 = inlined_call_operand.vmem [shape: f32[1,16], index: 4, kind: input, shape index: {}]   ;;  %s2194_s5 = inlined_call_operand.vmem [shape: f32[1,32], index: 5, kind: input, shape index: {}]   ;;  %s2195_s6 = inlined_call_operand.vmem [shape: f32[1,32], index: 6, kind: input, shape index: {}]   ;;  %s2196_s7 = inlined_call_operand.hbm [shape: f32[2,16,32], index: 7, kind: output, shape index: {0}]   ;;  %s2197_s8 = inlined_call_operand.hbm [shape: bf16[2,16,32], index: 8, kind: output, shape index: {1}]  }
   0x1   :  { %2203 = sst [smem:[#allocation18_spill]] %s2189_s0 }
   0x2   :  { %2204 = sst [smem:[#allocation19_spill]] %s2191_s2 }
   0x3   :  { %14 = vsyncpa [#allocation5], 0 }
   0x4   :  { %15 = vsyncpa [#allocation3], 0 }
   0x5   :  { %17 = vsyncpa [#allocation3 + $0x1], 0 }
   0x6   :  { %18 = vsyncpa [#allocation8], 0 }
   0x7   :  { %19 = vsyncpa [#allocation4], 0 }
   0x8   :  { %21 = vsyncpa [#allocation4 + $0x1], 0 }
   0x9   :  { %22 = vsyncpa [#allocation12], 0 }
   0xa   :  { %24 = vsyncpa [#allocation12 + $0x1], 0  ;;  %s1828_s27 = smov 0   ;;  %s1830_s28 = smov 0  }
   0xb   :  { %s1832_s29 = smov 0   ;;  %s1834_s30 = smov 0  }
   0xc LB: > { %s1849_s9 = sadd.s32 4294967295, %s1756_s30   ;;  %s1279_s10 = sadd.s32 4294967294, %s1756_s30   ;;  %s1756_s30 = sphi %s1834_s30, %s2226_s30   ;;  %s1752_s29 = sphi %s1832_s29, %s2225_s29   ;;  %s1748_s28 = sphi %s1830_s28, %s2224_s28   ;;  %s1744_s27 = sphi %s1828_s27, %s2223_s27  }
   0xd   : > { %p71_p0 = scmp.ne.s32.totalorder %s1748_s28, %s1744_s27  ;;  %p2198_p1 = scmp.eq.s32.totalorder %s1849_s9, 0 }
   0xe   : > { %p200_p2 = scmp.eq.s32.totalorder %s1849_s9, 1  ;;  %p206_p3 = scmp.eq.s32.totalorder %s1279_s10, 1 }
   0xf   : > { %p1858_p4 = por %p2198_p1, %p71_p0  ;;  %p1280_p5 = scmp.ge.s32.totalorder %s1756_s30, 1 }
  0x10   : > { %p1863_p6 = por %p206_p3, %p71_p0  ;;  %p239_p7 = scmp.lt.s32.totalorder %s1756_s30, 3 }
  0x11   : > { %s2205_s11 = scalar_select %p1858_p4, 1, 0 }
  0x12   : > { %s2206_s12 = scalar_select %p1863_p6, 1, 0 }
  0x13   : > { %p1868_p8 = pnand %p1280_p5, %p239_p7  ;;  %s1758_s14 = smov [#allocation7]  }
  0x14   : > { %s260_s15 = sshll.u32 %s1758_s14, 4  ;;  %s1759_s17 = smov [#allocation9]   ;;  %s261_s15 = int_to_ptr.vmem [resolvable:$true] %s260_s15 }
  0x15   : > { %s2207_s13 = scalar_select %p1868_p8, 1, 0 }
  0x16   : > { %p1432_p9 = pneg %p1868_p8  ;;  %s273_s18 = sshll.u32 %s1759_s17, 4  ;;  %s274_s18 = int_to_ptr.vmem [resolvable:$true] %s273_s18 }
  0x17   : > { %s1574_s19 = scalar_lea.vmem %s261_s15, 256  ;;  %p1582_p5 = scmp.lt.s32.totalorder %s261_s15, %s261_s15 }
  0x18   : > { %p1877_p11 = pnand %p1432_p9, %p2198_p1  ;;  %p1575_p13 = scmp.ne.s32.totalorder %s261_s15, %s1574_s19 }
  0x19   : > { %p1583_p7 = scmp.lt.s32.totalorder %s1574_s19, %s1574_s19 }
  0x1a   : > { %p1565_p12 = pneg %p1877_p11 }
  0x1b   : > { %p1584_p10 = por %p1583_p7, %p1582_p5 }
  0x1c   : > { %p1577_p0 = pnand %p1575_p13, %p1565_p12 }
  0x1e   : > { %p1578_p3 = pneg %p1577_p0 }
  0x20   : > { %p1585_p9 = pnand %p1584_p10, %p1578_p3 }
  0x22   : > { %1588 = shalt.err (!%p1585_p9)
}
  0x23   : > { %s1760_s20 = smov 64   ;;  %s1761_s21 = smov 4  }
  0x24   : > { %s2209_s2 = sld [smem:[#allocation19_spill]]  ;;  %s1762_s24 = smov [#allocation2]  }
  0x25   : > { %s2210_s0 = sld [smem:[#allocation18_spill]]  ;;  %s1611_s10 = scalar_lea.vmem %s274_s18, 256 }
  0x26   : > { %p1612_p13 = scmp.ne.s32.totalorder %s274_s18, %s1611_s10  ;;  %p1619_p3 = scmp.lt.s32.totalorder %s274_s18, %s274_s18 }
  0x27   : > { %p1620_p5 = scmp.lt.s32.totalorder %s1611_s10, %s1611_s10 }
  0x28   : > { %p1614_p10 = pnand %p1612_p13, %p1565_p12 }
  0x29   : > { %p1621_p7 = por %p1620_p5, %p1619_p3 }
  0x2a   : > { %1438 = dma.hbm_to_vmem [thread:$0]  (!%p1877_p11), %s2209_s2, 256, %s261_s15, [#allocation8], %s1760_s20, %s1760_s20, %s1761_s21  }
  0x2b   : > { %1435 = dma.hbm_to_smem (!%p1877_p11), %s2210_s0, 16, %s1762_s24, [#allocation5]  }
  0x2c   : > { %p1615_p0 = pneg %p1614_p10 }
  0x2e   : > { %p1622_p9 = pnand %p1621_p7, %p1615_p0 }
  0x30   : > { %1625 = shalt.err (!%p1622_p9)
}
  0x31   : > { %1441 = dma.hbm_to_vmem [thread:$0]  (!%p1877_p11), %s2192_s3, 256, %s274_s18, [#allocation8], %s1760_s20, %s1760_s20, %s1761_s21  }
  0x32   : > { %s1905_s17 = sadd.s32 1, %s1756_s30   ;;  %s58_s16 = sadd.s32 1, %s1752_s29 }
  0x33   : > { %s55_s19 = ssub.s32 %s1756_s30, %s1905_s17  ;;  %p65_p13 = scmp.ne.s32.totalorder %s1752_s29, %s1748_s28 }
  0x34   : > { %p56_p12 = scmp.eq.s32.totalorder %s55_s19, 0  ;;  %p66_p10 = scmp.eq.s32.totalorder %s1756_s30, 0 }
  0x35   : > { %p1456_p0 = scmp.lt.s32.totalorder %s1756_s30, 2  ;;  %p1919_p5 = por %p200_p2, %p65_p13 }
  0x36   : > { %s1915_s22 = scalar_select %p56_p12, %s1752_s29, %s58_s16  }
  0x37   : > { %p67_p3 = por %p66_p10, %p65_p13  ;;  %s296_s24 = sand.u32 1, %s1752_s29  }
  0x38   : > { %s2211_s23 = scalar_select %p1919_p5, 1, 0 }
  0x39   : > { %s1323_s25 = sshll.u32 %s1756_s30, 8  ;;  %s1285_s18 = sshll.u32 %s296_s24, 4 }
  0x3a   : > { %s1928_s26 = scalar_lea.hbm %s2190_s1, %s1323_s25  ;;  %s300_s10 = scalar_lea.vmem [#allocation6], %s1285_s18 }
  0x3b   : > { %s307_s14 = sshll.u32 %s300_s10, 4  ;;  %p1930_p11 = pnand %p1456_p0, %p67_p3  ;;  %s1934_s14 = int_to_ptr.vmem [resolvable:$true] %s307_s14 }
  0x3c   : > { %s1936_s19 = scalar_lea.sflag [#allocation3], %s296_s24  ;;  %s1626_s16 = scalar_lea.hbm %s1928_s26, 256 }
  0x3d   : > { %p1627_p2 = scmp.ne.s32.totalorder %s1928_s26, %s1626_s16  ;;  %p1628_p7 = pneg %p1930_p11 }
  0x3e   : > { %s1631_s18 = scalar_lea.hbm %s2190_s1, 512  ;;  %p1632_p13 = scmp.lt.s32.totalorder %s1928_s26, %s2190_s1 }
  0x3f   : > { %p1629_p9 = pnand %p1628_p7, %p1627_p2  ;;  %p1633_p10 = scmp.lt.s32.totalorder %s1631_s18, %s1626_s16 }
  0x41   : > { %p1630_p12 = pneg %p1629_p9  ;;  %p1634_p0 = por %p1633_p10, %p1632_p13 }
  0x43   : > { %p1635_p3 = pnand %p1634_p0, %p1630_p12 }
  0x45   : > { %1638 = shalt.err (!%p1635_p3)
}
  0x46   : > { %s1639_s24 = scalar_lea.vmem %s1934_s14, 256  ;;  %s1763_s0 = smov [#allocation6]  }
  0x47   : > { %p1640_p1 = scmp.ne.s32.totalorder %s1934_s14, %s1639_s24  ;;  %s1644_s2 = sshll.u32 %s1763_s0, 4  ;;  %s1645_s2 = int_to_ptr.vmem [resolvable:$false] %s1644_s2 }
  0x48   : > { %s1646_s25 = scalar_lea.vmem %s1645_s2, 512  ;;  %p1647_p9 = scmp.lt.s32.totalorder %s1934_s14, %s1645_s2 }
  0x49   : > { %p1642_p6 = pnand %p1640_p1, %p1628_p7  ;;  %p1648_p5 = scmp.lt.s32.totalorder %s1646_s25, %s1639_s24 }
  0x4b   : > { %p1643_p2 = pneg %p1642_p6  ;;  %p1649_p4 = por %p1648_p5, %p1647_p9 }
  0x4d   : > { %p1650_p8 = pnand %p1649_p4, %p1643_p2 }
  0x4f   : > { %1653 = shalt.err (!%p1650_p8)
}
  0x50   : > { %s1764_s16 = smov 128   ;;  %s1765_s20 = smov 8  }
  0x51   : > { %1445 = dma.hbm_to_vmem [thread:$0]  (!%p1930_p11), %s1928_s26, 256, %s1934_s14, %s1936_s19, %s1764_s16, %s1764_s16, %s1765_s20  }
  0x52   : > { %p2213_p1 = scmp.ne.s32.totalorder %s2207_s13, 0 }
  0x53   : > { %p2214_p6 = scmp.eq.s32.totalorder (!%p2213_p1), %s1849_s9, 0 }
  0x54   : > { %319 = sbr.rel (%p2213_p1) target bundleno = 2491 (0x9bb), region = 48 }
  0x59   : > { %1723 = dma.done.wait (%p2214_p6), [#allocation5], 16   ;;  %p2215_p7 = pmov %p2214_p6 }
  0x5a   : > { %s1964_s0 = sand.u32 1, %s1748_s28   ;;  %p2216_p4 = scmp.ne.s32.totalorder %s2205_s11, 0 }
  0x5b   : > { %1725 = vsyncadd (%p2215_p7), [#allocation5], 4294967280  ;;  %s1290_s2 = sshll.u32 %s1964_s0, 4  ;;  %s326_s18 = scalar_lea.sflag [#allocation3], %s1964_s0 }
  0x5c   : > { %s329_s26 = scalar_lea.vmem [#allocation6], %s1290_s2 }
  0x5d   : > { %1727 = dma.done.wait (%p2216_p4), %s326_s18, 256  }
  0x5e   : > { %1729 = vsyncadd (%p2216_p4), %s326_s18, 4294967040  ;;  %p2217_p8 = pmov %p2214_p6 }
  0x5f   : > { %p2218_p5 = pmov %p2214_p6 }
  0x60   : > { %1731 = dma.done.wait (%p2217_p8), [#allocation8], 512  }
  0x61   : > { %1733 = vsyncadd (%p2218_p5), [#allocation8], 4294966784 }
  0x62   : > { %342 = sfence }
  0x63   : > { %v1515_v0 = vld [vmem:[#allocation7 + $0x8] sm:$0xff]   ;;  %v1766_v1 = vmov 0.0   ;;  %v1516_v2 = vld [vmem:[#allocation7] sm:$0xff]   ;;  %vm1767_vm0 = vmmov 0   ;;  %vm399_vm1 = vcmask 261120   ;;  %s1768_s11 = smov 112  }
  0x64   : > { %1350 = vmatprep.subr.bf16.mxu0 %v1766_v1  ;;  %1358 = vmatprep.subr.bf16.mxu1 %v1766_v1  ;;  %v1982_v3 = vld [vmem:[%s329_s26] sm:$0xff]  ;;  %v1984_v4 = vld [vmem:[%s329_s26 + $0x8] sm:$0xff]  ;;  %s1769_s13 = smov 80   ;;  %s1770_s14 = smov 96   ;;  %vm448_vm2 = vcmask 64512   ;;  %vm547_vm3 = vcmask 130048  }
  0x65   : > { %1351 = vmatpush3.bf16.msra.mxu0 %v1515_v0  ;;  %1354 = vmatprep.mubr.msk.bf16.mxu0 %vm1767_vm0, %v1766_v1  ;;  %v382_v5 = vpack.c.bf16 %v1984_v4, %v1982_v3  ;;  %s1771_s15 = smov 72   ;;  %s1772_s19 = smov 88   ;;  %vm1105_vm4 = vcmask 257024  }
  0x66   : > { %1352 = vmatprep.subr.bf16.mxu0 %v1766_v1  ;;  %1360 = vmatprep.mubr.msk.bf16.mxu1 %vm1767_vm0, %v1766_v1  ;;  %s1773_s21 = smov 120   ;;  %s2202_s10 = smov 64  }
  0x67   : > { %s1775_s24 = smov 104   ;;  %s377_s25 = sld [smem:[#allocation2]] }
  0x68   : > { %s1776_s16 = smov 48   ;;  %s1295_s20 = sld [smem:[#allocation2 + $0x1]] }
  0x69   : > { %1353 = vmatpush3.bf16.msra.mxu0 %v1516_v2  ;;  %p2219_p12 = scmp.ne.s32.totalorder %s2211_s23, 0 }
  0x6a   : > { %1364 = vmatprep.subr.bf16.mxu0 %v1766_v1 }
  0x6c   : > { %1355 = vmatmul.mubr.msk.bf16.vlgmr.msra.gmra.mxu0 %vm399_vm1, %v382_v5 }
  0x6d   : > { %1366 = vmatprep.mubr.msk.bf16.mxu0 %vm1767_vm0, %v1766_v1 }
 0x12c   : > { %v437_v6 = vpop.f32.mrf.mxu0 }
 0x12e   : > { %v1356_v7 = vpop.f32.mrf.mxu0 }
 0x130   : > { %v440_v8 = vpop.f32.mrf.mxu0 }
 0x131   : > { %v1995_v9 = vpack.c.bf16 %v440_v8, %v437_v6 }
 0x132   : > { %v1357_v10 = vpop.f32.mrf.mxu0 }
 0x133   : > { %496 = vrot.lane.b32.xlu1 %v1995_v9, %s1768_s11  ;;  %498 = vrot.lane.b32.xlu0 %v1995_v9, %s1769_s13  ;;  %v2043_v10 = vstv %s377_s25  ;;  %s1777_s11 = smov 16   ;;  %s368_s25 = scalar_lea.vmem [#allocation10], %s1290_s2 }
 0x137   : > { %446 = vrot.lane.b32.xlu0 %v1995_v9, %s1770_s14 }
 0x1a5   : > { %v499_v11 = vpop.permute.xlu0 %498  ;;  %v497_v15 = vpop.permute.xlu1 %496 }
 0x1a6   : > { %v504_v12 = vsel %vm448_vm2, %v499_v11, 0 }
 0x1a7   : > { %1365 = vmatpush3.bf16.xpose.msra.mxu0 %v504_v12 }
 0x1a8   : > { %1376 = vmatprep.subr.bf16.mxu0 %v1766_v1 }
 0x1a9   : > { %v447_v13 = vpop.permute.xlu0 %446 }
 0x1aa   : > { %v453_v14 = vsel %vm448_vm2, %v447_v13, 0 }
 0x1ab   : > { %1359 = vmatpush3.bf16.xpose.msra.mxu1 %v453_v14 }
 0x1ac   : > { %1370 = vmatprep.subr.bf16.mxu1 %v1766_v1 }
 0x1ae   : > { %1367 = vmatmul.mubr.msk.bf16.vlgmr.msra.gmra.mxu0 %vm448_vm2, %v497_v15 }
 0x1af   : > { %1378 = vmatprep.mubr.msk.bf16.mxu0 %vm1767_vm0, %v1766_v1 }
 0x1b2   : > { %1361 = vmatmul.mubr.msk.bf16.vlgmr.msra.gmra.mxu1 %vm448_vm2, %v1995_v9 }
 0x1b3   : > { %1372 = vmatprep.mubr.msk.bf16.mxu1 %vm1767_vm0, %v1766_v1 }
 0x26e   : > { %v540_v16 = vpop.f32.mrf.mxu0 }
 0x26f   : > { %v570_v17 = vsel %vm547_vm3, %v540_v16, -inf }
 0x270   : > { %571 = vmax.xlane.f32.xlu1 %v570_v17  ;;  %v1368_v18 = vpop.f32.mrf.mxu0 }
 0x272   : > { %v489_v19 = vpop.f32.mrf.mxu1  ;;  %v543_v20 = vpop.f32.mrf.mxu0 }
 0x273   : > { %v573_v21 = vsel %vm547_vm3, %v543_v20, -inf  ;;  %v548_v26 = vsel %vm547_vm3, %v489_v19, -inf }
 0x274   : > { %v1362_v22 = vpop.f32.mrf.mxu1  ;;  %574 = vmax.xlane.f32.xlu0 %v573_v21  ;;  %v1369_v23 = vpop.f32.mrf.mxu0 }
 0x276   : > { %v492_v24 = vpop.f32.mrf.mxu1 }
 0x277   : > { %v551_v25 = vsel %vm547_vm3, %v492_v24, -inf }
 0x278   : > { %v1363_v27 = vpop.f32.mrf.mxu1  ;;  %552 = vmax.xlane.f32.xlu1 %v551_v25  ;;  %549 = vmax.xlane.f32.xlu0 %v548_v26 }
 0x289   : > { %772 = vrot.lane.b32.xlu1 %v1995_v9, %s1771_s15 }
 0x2f9   : > { %v572_v28 = vpop.xlane.xlu1 %571 }
 0x2fa   : > { %v576_v29 = vsub.f32 %v540_v16, %v572_v28 }
 0x2fc   : > { %v578_v30 = vmul.f32 1.442695, %v576_v29 }
 0x2fd   : > { %v575_v31 = vpop.xlane.xlu0 %574 }
 0x2fe   : > { %1519 = vpow2.f32 %v578_v30  ;;  %v577_v32 = vsub.f32 %v543_v20, %v575_v31 }
 0x300   : > { %v580_v33 = vmul.f32 1.442695, %v577_v32 }
 0x301   : > { %v553_v34 = vpop.xlane.xlu1 %552  ;;  %v550_v35 = vpop.xlane.xlu0 %549 }
 0x302   : > { %1521 = vpow2.f32 %v580_v33  ;;  %v555_v36 = vsub.f32 %v492_v24, %v553_v34  ;;  %v554_v37 = vsub.f32 %v489_v19, %v550_v35 }
 0x304   : > { %v558_v38 = vmul.f32 1.442695, %v555_v36  ;;  %v556_v39 = vmul.f32 1.442695, %v554_v37 }
 0x305   : > { %v773_v48 = vpop.permute.xlu1 %772 }
 0x306   : > { %1523 = vpow2.f32 %v558_v38  ;;  %v778_v61 = vsel %vm448_vm2, %v773_v48, 0 }
 0x307   : > { %1525 = vpow2.f32 %v556_v39 }
 0x30b   : > { %v1520_v40 = vpop.eup %1519 }
 0x30c   : > { %v582_v41 = vsel %vm547_vm3, %v1520_v40, 0.0 }
 0x30d   : > { %583 = vadd.xlane.f32.xlu0 %v582_v41 }
 0x30f   : > { %v1522_v42 = vpop.eup %1521 }
 0x310   : > { %v585_v43 = vsel %vm547_vm3, %v1522_v42, 0.0 }
 0x311   : > { %586 = vadd.xlane.f32.xlu1 %v585_v43 }
 0x313   : > { %v1524_v44 = vpop.eup %1523 }
 0x314   : > { %v1526_v45 = vpop.eup %1525  ;;  %v563_v46 = vsel %vm547_vm3, %v1524_v44, 0.0 }
 0x315   : > { %564 = vadd.xlane.f32.xlu1 %v563_v46  ;;  %v560_v47 = vsel %vm547_vm3, %v1526_v45, 0.0 }
 0x316   : > { %561 = vadd.xlane.f32.xlu0 %v560_v47 }
 0x326   : > { %721 = vrot.lane.b32.xlu1 %v1995_v9, %s1772_s19 }
 0x32a   : > { %719 = vrot.lane.b32.xlu1 %v1995_v9, %s1773_s21  ;;  %s1294_s21 = sshll.u32 %s1964_s0, 3 }
 0x32b   : > { %s2108_s2 = scalar_lea.vmem [#allocation11], %s1294_s21 }
 0x32c   : > { %593 = vrot.lane.b32.xlu0 %v1995_v9, %s2202_s10  ;;  %s1143_s13 = sshll.u32 %s2108_s2, 4  ;;  %s2119_s13 = int_to_ptr.vmem [resolvable:$true] %s1143_s13 }
 0x330   : > { %770 = vrot.lane.b32.xlu0 %v1995_v9, %s1775_s24  ;;  %s1326_s24 = sshll.u32 %s1849_s9, 8 }
 0x331   : > { %s2103_s26 = scalar_lea.hbm %s2196_s7, %s1326_s24  ;;  %s1778_s24 = smov [#allocation10]  }
 0x396   : > { %v584_v49 = vpop.xlane.xlu0 %583 }
 0x397   : > { %1527 = vrcp.f32 %v584_v49 }
 0x39a   : > { %v587_v50 = vpop.xlane.xlu1 %586 }
 0x39b   : > { %1529 = vrcp.f32 %v587_v50 }
 0x39e   : > { %v565_v51 = vpop.xlane.xlu1 %564 }
 0x39f   : > { %1531 = vrcp.f32 %v565_v51  ;;  %v562_v52 = vpop.xlane.xlu0 %561 }
 0x3a0   : > { %1533 = vrcp.f32 %v562_v52 }
 0x3a2   : > { %v722_v0 = vpop.permute.xlu1 %721 }
 0x3a3   : > { %v594_v53 = vpop.permute.xlu0 %593  ;;  %v727_v5 = vsel %vm448_vm2, %v722_v0, 0 }
 0x3a4   : > { %1371 = vmatpush3.bf16.msra.mxu1 %v594_v53  ;;  %1377 = vmatpush3.bf16.msra.mxu0 %v594_v53  ;;  %v1528_v54 = vpop.eup %1527 }
 0x3a5   : > { %1388 = vmatprep.subr.bf16.mxu0 %v1766_v1  ;;  %1382 = vmatprep.subr.bf16.mxu1 %v1766_v1  ;;  %v590_v56 = vmul.f32 %v1528_v54, %v1520_v40 }
 0x3a6   : > { %v720_v7 = vpop.permute.xlu1 %719 }
 0x3a7   : > { %v771_v6 = vpop.permute.xlu0 %770 }
 0x3a8   : > { %v1530_v55 = vpop.eup %1529 }
 0x3a9   : > { %v591_v57 = vmul.f32 %v1530_v55, %v1522_v42 }
 0x3ab   : > { %v640_v58 = vpack.c.bf16 %v591_v57, %v590_v56 }
 0x3ac   : > { %v1532_v59 = vpop.eup %1531 }
 0x3ad   : > { %v1534_v60 = vpop.eup %1533  ;;  %1379 = vmatmul.mubr.msk.bf16.vlgmr.msra.gmra.mxu0 %vm547_vm3, %v640_v58  ;;  %v569_v62 = vmul.f32 %v1532_v59, %v1524_v44 }
 0x3ae   : > { %1389 = vmatpush3.bf16.xpose.msra.mxu0 %v778_v61  ;;  %v568_v63 = vmul.f32 %v1534_v60, %v1526_v45  ;;  %1390 = vmatprep.mubr.msk.bf16.mxu0 %vm1767_vm0, %v1766_v1 }
 0x3af   : > { %1400 = vmatprep.subr.bf16.mxu0 %v1766_v1 }
 0x3b0   : > { %v592_v2 = vpack.c.bf16 %v569_v62, %v568_v63 }
 0x3b2   : > { %1373 = vmatmul.mubr.msk.bf16.vlgmr.msra.gmra.mxu1 %vm547_vm3, %v592_v2 }
 0x3b3   : > { %1383 = vmatpush3.bf16.xpose.msra.mxu1 %v727_v5  ;;  %1384 = vmatprep.mubr.msk.bf16.mxu1 %vm1767_vm0, %v1766_v1 }
 0x3b4   : > { %1394 = vmatprep.subr.bf16.mxu1 %v1766_v1 }
 0x3b5   : > { %1391 = vmatmul.mubr.msk.bf16.vlgmr.msra.gmra.mxu0 %vm448_vm2, %v771_v6 }
 0x3b6   : > { %1402 = vmatprep.mubr.msk.bf16.mxu0 %vm1767_vm0, %v1766_v1 }
 0x3ba   : > { %1385 = vmatmul.mubr.msk.bf16.vlgmr.msra.gmra.mxu1 %vm448_vm2, %v720_v7 }
 0x3bb   : > { %1396 = vmatprep.mubr.msk.bf16.mxu1 %vm1767_vm0, %v1766_v1 }
 0x46d   : > { %v678_v8 = vpop.f32.mrf.mxu0 }
 0x46e   : > { %v686_v12 = vmul.f32 %v2043_v10, %v678_v8 }
 0x46f   : > { %v1380_v11 = vpop.f32.mrf.mxu0 }
 0x471   : > { %v681_v13 = vpop.f32.mrf.mxu0 }
 0x472   : > { %v633_v14 = vpop.f32.mrf.mxu1  ;;  %v687_v18 = vmul.f32 %v2043_v10, %v681_v13 }
 0x473   : > { %v2046_v15 = vsub.f32 %v633_v14, %v686_v12  ;;  %v1381_v16 = vpop.f32.mrf.mxu0 }
 0x474   : > { %v1374_v17 = vpop.f32.mrf.mxu1 }
 0x475   : > { %v814_v19 = vpop.f32.mrf.mxu0 }
 0x476   : > { %v636_v20 = vpop.f32.mrf.mxu1  ;;  %v843_v21 = vsel %vm547_vm3, %v814_v19, -inf }
 0x477   : > { %v2050_v22 = vsub.f32 %v636_v20, %v687_v18  ;;  %844 = vmax.xlane.f32.xlu0 %v843_v21  ;;  %v1392_v23 = vpop.f32.mrf.mxu0 }
 0x478   : > { %v1375_v24 = vpop.f32.mrf.mxu1 }
 0x479   : > { %v817_v25 = vpop.f32.mrf.mxu0 }
 0x47a   : > { %v763_v26 = vpop.f32.mrf.mxu1  ;;  %v846_v27 = vsel %vm547_vm3, %v817_v25, -inf }
 0x47b   : > { %v821_v28 = vsel %vm547_vm3, %v763_v26, -inf  ;;  %847 = vmax.xlane.f32.xlu1 %v846_v27  ;;  %v1393_v29 = vpop.f32.mrf.mxu0  ;;  %v690_v27 = vmul.f32 %v2046_v15, %v2046_v15 }
 0x47c   : > { %v1386_v30 = vpop.f32.mrf.mxu1  ;;  %822 = vmax.xlane.f32.xlu0 %v821_v28  ;;  %v691_v29 = vmul.f32 %v2050_v22, %v2050_v22 }
 0x47d   : > { %v692_v28 = vsel %vm547_vm3, %v690_v27, 0.0  ;;  %v1517_v30 = vld [vmem:[#allocation9 + $0x8] sm:$0xff]  }
 0x47e   : > { %v766_v31 = vpop.f32.mrf.mxu1 }
 0x47f   : > { %v824_v32 = vsel %vm547_vm3, %v766_v31, -inf }
 0x480   : > { %v1387_v33 = vpop.f32.mrf.mxu1  ;;  %825 = vmax.xlane.f32.xlu0 %v824_v32 }
 0x500   : > { %v845_v34 = vpop.xlane.xlu0 %844 }
 0x501   : > { %v849_v35 = vsub.f32 %v814_v19, %v845_v34 }
 0x503   : > { %v851_v36 = vmul.f32 1.442695, %v849_v35 }
 0x504   : > { %v848_v37 = vpop.xlane.xlu1 %847 }
 0x505   : > { %1535 = vpow2.f32 %v851_v36  ;;  %v823_v38 = vpop.xlane.xlu0 %822  ;;  %v850_v39 = vsub.f32 %v817_v25, %v848_v37 }
 0x506   : > { %v827_v40 = vsub.f32 %v763_v26, %v823_v38 }
 0x507   : > { %v853_v41 = vmul.f32 1.442695, %v850_v39 }
 0x508   : > { %v829_v42 = vmul.f32 1.442695, %v827_v40 }
 0x509   : > { %1537 = vpow2.f32 %v853_v41  ;;  %v826_v43 = vpop.xlane.xlu0 %825 }
 0x50a   : > { %1539 = vpow2.f32 %v829_v42  ;;  %v828_v44 = vsub.f32 %v766_v31, %v826_v43  ;;  %v1518_v31 = vld [vmem:[#allocation9] sm:$0xff]  }
 0x50c   : > { %v831_v45 = vmul.f32 1.442695, %v828_v44 }
 0x50e   : > { %1541 = vpow2.f32 %v831_v45  ;;  %v1303_v45 = vld [vmem:[%s2193_s4] ss:$0 sm:$0xff] }
 0x512   : > { %v1536_v46 = vpop.eup %1535 }
 0x513   : > { %v855_v47 = vsel %vm547_vm3, %v1536_v46, 0.0 }
 0x514   : > { %856 = vadd.xlane.f32.xlu1 %v855_v47 }
 0x516   : > { %v1538_v48 = vpop.eup %1537 }
 0x517   : > { %v1540_v49 = vpop.eup %1539  ;;  %v858_v50 = vsel %vm547_vm3, %v1538_v48, 0.0 }
 0x518   : > { %v833_v51 = vsel %vm547_vm3, %v1540_v49, 0.0  ;;  %859 = vadd.xlane.f32.xlu0 %v858_v50 }
 0x519   : > { %834 = vadd.xlane.f32.xlu1 %v833_v51 }
 0x51b   : > { %v1542_v52 = vpop.eup %1541 }
 0x51c   : > { %v836_v53 = vsel %vm547_vm3, %v1542_v52, 0.0 }
 0x51d   : > { %837 = vadd.xlane.f32.xlu0 %v836_v53 }
 0x52a   : > { %866 = vrot.lane.b32.xlu1 %v1995_v9, %s1776_s16  ;;  %s1127_s16 = sshll.u32 %s368_s25, 4  ;;  %s2106_s16 = int_to_ptr.vmem [resolvable:$true] %s1127_s16 }
 0x52b   : > { %s1654_s21 = scalar_lea.vmem %s2106_s16, 256 }
 0x52c   : > { %p1655_p11 = scmp.ne.s32.totalorder %s2106_s16, %s1654_s21 }
 0x52e   : > { %p1656_p13 = pnand %p1655_p11, %p2219_p12 }
 0x530   : > { %p1657_p10 = pneg %p1656_p13 }
 0x59d   : > { %v857_v54 = vpop.xlane.xlu1 %856 }
 0x59e   : > { %1543 = vrcp.f32 %v857_v54 }
 0x5a1   : > { %v860_v55 = vpop.xlane.xlu0 %859 }
 0x5a2   : > { %1545 = vrcp.f32 %v860_v55  ;;  %v835_v56 = vpop.xlane.xlu1 %834 }
 0x5a3   : > { %1547 = vrcp.f32 %v835_v56 }
 0x5a6   : > { %v838_v57 = vpop.xlane.xlu0 %837  ;;  %v867_v58 = vpop.permute.xlu1 %866 }
 0x5a7   : > { %1549 = vrcp.f32 %v838_v57  ;;  %1395 = vmatpush3.bf16.msra.mxu1 %v867_v58  ;;  %1401 = vmatpush3.bf16.msra.mxu0 %v867_v58 }
 0x5a8   : > { %1406 = vmatprep.subr.bf16.mxu1 %v1766_v1 }
 0x5ab   : > { %v1544_v59 = vpop.eup %1543 }
 0x5ac   : > { %v863_v61 = vmul.f32 %v1544_v59, %v1536_v46 }
 0x5af   : > { %v1546_v60 = vpop.eup %1545 }
 0x5b0   : > { %v864_v62 = vmul.f32 %v1546_v60, %v1538_v48  ;;  %v1548_v63 = vpop.eup %1547 }
 0x5b1   : > { %v841_v2 = vmul.f32 %v1548_v63, %v1540_v49  ;;  %v715_v49 = vstv %s1295_s20  ;;  %s1658_s20 = sshll.u32 %s1778_s24, 4  ;;  %s1659_s20 = int_to_ptr.vmem [resolvable:$false] %s1658_s20 }
 0x5b2   : > { %v913_v0 = vpack.c.bf16 %v864_v62, %v863_v61  ;;  %s1660_s18 = scalar_lea.vmem %s1659_s20, 512  ;;  %p1661_p0 = scmp.lt.s32.totalorder %s2106_s16, %s1659_s20 }
 0x5b3   : > { %p1662_p3 = scmp.lt.s32.totalorder %s1660_s18, %s1654_s21 }
 0x5b4   : > { %v1550_v9 = vpop.eup %1549  ;;  %1403 = vmatmul.mubr.msk.bf16.vlgmr.msra.gmra.mxu0 %vm547_vm3, %v913_v0 }
 0x5b5   : > { %v842_v5 = vmul.f32 %v1550_v9, %v1542_v52  ;;  %p1663_p2 = por %p1662_p3, %p1661_p0 }
 0x5b7   : > { %v865_v6 = vpack.c.bf16 %v842_v5, %v841_v2  ;;  %p1664_p9 = pnand %p1663_p2, %p1657_p10 }
 0x5b9   : > { %1397 = vmatmul.mubr.msk.bf16.vlgmr.msra.gmra.mxu1 %vm547_vm3, %v865_v6 }
 0x5ba   : > { %1410 = vmatprep.mubr.msk.bf16.mxu1 %vm1767_vm0, %v1766_v1  ;;  %1407 = vmatpush3.bf16.msra.mxu1 %v1517_v30 }
 0x5bb   : > { %1408 = vmatprep.subr.bf16.mxu1 %v1766_v1 }
 0x5be   : > { %1409 = vmatpush3.bf16.msra.mxu1 %v1518_v31  ;;  %v1312_v31 = vld [vmem:[%s2195_s6] ss:$0 sm:$0xff] }
 0x674   : > { %v951_v7 = vpop.f32.mrf.mxu0 }
 0x675   : > { %v958_v11 = vmul.f32 %v951_v7, %v2043_v10 }
 0x676   : > { %v1404_v8 = vpop.f32.mrf.mxu0 }
 0x678   : > { %v954_v12 = vpop.f32.mrf.mxu0 }
 0x679   : > { %v906_v13 = vpop.f32.mrf.mxu1  ;;  %v959_v18 = vmul.f32 %v954_v12, %v2043_v10  ;;  %v695_v10 = vsel %vm547_vm3, %v691_v29, 0.0 }
 0x67a   : > { %v960_v14 = vsub.f32 %v906_v13, %v958_v11  ;;  %v1405_v16 = vpop.f32.mrf.mxu0 }
 0x67b   : > { %v1398_v17 = vpop.f32.mrf.mxu1 }
 0x67c   : > { %v962_v19 = vmul.f32 %v960_v14, %v960_v14 }
 0x67d   : > { %v909_v20 = vpop.f32.mrf.mxu1 }
 0x67e   : > { %v961_v21 = vsub.f32 %v909_v20, %v959_v18  ;;  %v964_v23 = vsel %vm547_vm3, %v962_v19, 0.0 }
 0x67f   : > { %v1399_v24 = vpop.f32.mrf.mxu1  ;;  %965 = vadd.xlane.f32.xlu0 %v964_v23 }
 0x680   : > { %v963_v25 = vmul.f32 %v961_v21, %v961_v21 }
 0x682   : > { %v967_v26 = vsel %vm547_vm3, %v963_v25, 0.0 }
 0x683   : > { %968 = vadd.xlane.f32.xlu0 %v967_v26 }
 0x687   : > { %693 = vadd.xlane.f32.xlu0 %v692_v28  ;;  %v1311_v28 = vld [vmem:[%s2194_s5] ss:$0 sm:$0xff] }
 0x68b   : > { %696 = vadd.xlane.f32.xlu0 %v695_v10 }
 0x708   : > { %v966_v32 = vpop.xlane.xlu0 %965 }
 0x709   : > { %v970_v33 = vmul.f32 0.0625, %v966_v32 }
 0x70b   : > { %v972_v34 = vadd.f32 1e-05, %v970_v33 }
 0x70c   : > { %v969_v35 = vpop.xlane.xlu0 %968 }
 0x70d   : > { %1551 = vrsqrt.f32 %v972_v34  ;;  %v971_v36 = vmul.f32 0.0625, %v969_v35 }
 0x70f   : > { %v973_v37 = vadd.f32 1e-05, %v971_v36 }
 0x710   : > { %v694_v38 = vpop.xlane.xlu0 %693 }
 0x711   : > { %1553 = vrsqrt.f32 %v973_v37  ;;  %v699_v39 = vmul.f32 0.0625, %v694_v38 }
 0x713   : > { %v701_v40 = vadd.f32 1e-05, %v699_v39 }
 0x714   : > { %v697_v41 = vpop.xlane.xlu0 %696 }
 0x715   : > { %1555 = vrsqrt.f32 %v701_v40  ;;  %v700_v42 = vmul.f32 0.0625, %v697_v41 }
 0x717   : > { %v702_v43 = vadd.f32 1e-05, %v700_v42 }
 0x719   : > { %1557 = vrsqrt.f32 %v702_v43 }
 0x71a   : > { %v1552_v44 = vpop.eup %1551 }
 0x71b   : > { %v976_v1 = vmul.f32 %v1552_v44, %v960_v14 }
 0x71d   : > { %v978_v48 = vmul.f32 %v1303_v45, %v976_v1 }
 0x71e   : > { %v1554_v46 = vpop.eup %1553 }
 0x71f   : > { %v977_v47 = vmul.f32 %v1554_v46, %v961_v21  ;;  %v980_v52 = vmul.f32 %v978_v48, %v715_v49 }
 0x721   : > { %v979_v50 = vmul.f32 %v1303_v45, %v977_v47 }
 0x722   : > { %v1556_v51 = vpop.eup %1555 }
 0x723   : > { %v981_v53 = vmul.f32 %v979_v50, %v715_v49  ;;  %v705_v54 = vmul.f32 %v1556_v51, %v2046_v15 }
 0x725   : > { %v982_v55 = vpack.c.bf16 %v981_v53, %v980_v52  ;;  %v713_v56 = vmul.f32 %v1303_v45, %v705_v54 }
 0x726   : > { %v1558_v57 = vpop.eup %1557 }
 0x727   : > { %984 = vrot.lane.b32.xlu1 %v982_v55, %s1777_s11  ;;  %v706_v58 = vmul.f32 %v1558_v57, %v2050_v22  ;;  %v716_v59 = vmul.f32 %v715_v49, %v713_v56  ;;  %s1327_s11 = sshll.u32 %s1849_s9, 7  ;;  %s1109_s9 = scalar_lea.sflag [#allocation4], %s1964_s0 }
 0x728   : > { %s2116_s19 = scalar_lea.hbm %s2197_s8, %s1327_s11 }
 0x729   : > { %v714_v60 = vmul.f32 %v1303_v45, %v706_v58 }
 0x72b   : > { %v717_v61 = vmul.f32 %v715_v49, %v714_v60 }
 0x72d   : > { %v718_v62 = vpack.c.bf16 %v717_v61, %v716_v59 }
 0x799   : > { %v985_v63 = vpop.permute.xlu1 %984 }
 0x79a   : > { %v988_v0 = vsel %vm547_vm3, %v718_v62, %v985_v63 }
 0x79b   : > { %1411 = vmatmul.mubr.msk.bf16.vlgmr.msra.gmra.mxu1 %vm399_vm1, %v988_v0 }
 0x85b   : > { %v1041_v9 = vpop.f32.mrf.mxu1 }
 0x85c   : > { %v1048_v2 = vsel %vm399_vm1, %v1041_v9, 0.0 }
 0x85d   : > { %1049 = vadd.xlane.f32.xlu0 %v1048_v2  ;;  %v1412_v15 = vpop.f32.mrf.mxu1 }
 0x85f   : > { %v1044_v5 = vpop.f32.mrf.mxu1 }
 0x860   : > { %v1051_v6 = vsel %vm399_vm1, %v1044_v5, 0.0 }
 0x861   : > { %1052 = vadd.xlane.f32.xlu1 %v1051_v6  ;;  %v1413_v7 = vpop.f32.mrf.mxu1 }
 0x8e6   : > { %v1050_v22 = vpop.xlane.xlu0 %1049 }
 0x8e7   : > { %v1055_v8 = vmul.f32 0.03125, %v1050_v22 }
 0x8e9   : > { %v1057_v11 = vsub.f32 %v1041_v9, %v1055_v8 }
 0x8ea   : > { %v1053_v12 = vpop.xlane.xlu1 %1052 }
 0x8eb   : > { %v1056_v13 = vmul.f32 0.03125, %v1053_v12  ;;  %v1059_v14 = vmul.f32 %v1057_v11, %v1057_v11 }
 0x8ed   : > { %v1058_v16 = vsub.f32 %v1044_v5, %v1056_v13  ;;  %v1061_v17 = vsel %vm399_vm1, %v1059_v14, 0.0 }
 0x8ee   : > { %1062 = vadd.xlane.f32.xlu0 %v1061_v17 }
 0x8ef   : > { %v1060_v18 = vmul.f32 %v1058_v16, %v1058_v16 }
 0x8f1   : > { %v1064_v19 = vsel %vm399_vm1, %v1060_v18, 0.0 }
 0x8f2   : > { %1065 = vadd.xlane.f32.xlu0 %v1064_v19 }
 0x977   : > { %v1063_v20 = vpop.xlane.xlu0 %1062 }
 0x978   : > { %v1067_v21 = vmul.f32 0.03125, %v1063_v20 }
 0x97a   : > { %v1069_v23 = vadd.f32 1e-05, %v1067_v21 }
 0x97b   : > { %v1066_v24 = vpop.xlane.xlu0 %1065 }
 0x97c   : > { %1559 = vrsqrt.f32 %v1069_v23  ;;  %v1068_v25 = vmul.f32 0.03125, %v1066_v24 }
 0x97e   : > { %v1070_v26 = vadd.f32 1e-05, %v1068_v25 }
 0x980   : > { %1561 = vrsqrt.f32 %v1070_v26 }
 0x989   : > { %v1560_v27 = vpop.eup %1559 }
 0x98a   : > { %v1073_v29 = vmul.f32 %v1560_v27, %v1057_v11 }
 0x98c   : > { %v1082_v10 = vmul.f32 %v1311_v28, %v1073_v29 }
 0x98d   : > { %v1562_v30 = vpop.eup %1561 }
 0x98e   : > { %v1074_v32 = vmul.f32 %v1562_v30, %v1058_v16  ;;  %v1084_v33 = vadd.f32 %v1082_v10, %v1982_v3 }
 0x990   : > { %v1083_v34 = vmul.f32 %v1311_v28, %v1074_v32  ;;  %v1093_v35 = vadd.f32 %v1312_v31, %v1084_v33 }
 0x992   : > { %v1085_v36 = vadd.f32 %v1083_v34, %v1984_v4  ;;  %1095 = vst.msk [vmem:[%s368_s25] sm:$0xff] %vm399_vm1, %v1093_v35  ;;  %v1324_v3 = vpack.c.bf16 %v1093_v35, %v1093_v35 }
 0x994   : > { %v1094_v4 = vadd.f32 %v1312_v31, %v1085_v36  ;;  %1106 = vst.msk [vmem:[%s2108_s2] sm:$0xf] %vm1105_vm4, %v1324_v3 }
 0x996   : > { %1096 = vst.msk [vmem:[%s368_s25 + $0x8] sm:$0xff] %vm399_vm1, %v1094_v4  ;;  %v1325_v37 = vpack.c.bf16 %v1094_v4, %v1094_v4 }
 0x997   : > { %1667 = shalt.err (!%p1664_p9)
}
 0x998   : > { %s1668_s25 = scalar_lea.hbm %s2103_s26, 256  ;;  %s1672_s15 = scalar_lea.hbm %s2196_s7, 512 }
 0x999   : > { %p1669_p1 = scmp.ne.s32.totalorder %s2103_s26, %s1668_s25  ;;  %p1673_p4 = scmp.lt.s32.totalorder %s2103_s26, %s2196_s7 }
 0x99a   : > { %p1674_p8 = scmp.lt.s32.totalorder %s1672_s15, %s1668_s25 }
 0x99b   : > { %p1670_p6 = pnand %p1669_p1, %p2219_p12 }
 0x99c   : > { %p1675_p5 = por %p1674_p8, %p1673_p4 }
 0x99d   : > { %p1671_p7 = pneg %p1670_p6 }
 0x99f   : > { %p1676_p11 = pnand %p1675_p5, %p1671_p7 }
 0x9a1   : > { %1679 = shalt.err (!%p1676_p11)
}
 0x9a2   : > { %s1779_s21 = smov 128   ;;  %s1780_s20 = smov 8   ;;  %1107 = vst.msk [vmem:[%s2108_s2 + $0x4] sm:$0xf] %vm1105_vm4, %v1325_v37 }
 0x9a3   : > { %1428 = dma.vmem_to_hbm [thread:$0]  (%p2219_p12), %s2106_s16, 256, %s2103_s26, %s1109_s9, %s1779_s21, %s1779_s21, %s1780_s20  }
 0x9a4   : > { %s1114_s10 = scalar_lea.sflag [#allocation12], %s1964_s0  ;;  %s1680_s18 = scalar_lea.vmem %s2119_s13, 128 }
 0x9a5   : > { %p1681_p13 = scmp.ne.s32.totalorder %s2119_s13, %s1680_s18  ;;  %s1781_s25 = smov [#allocation11]  }
 0x9a6   : > { %s1684_s11 = sshll.u32 %s1781_s25, 4  ;;  %s1685_s11 = int_to_ptr.vmem [resolvable:$false] %s1684_s11 }
 0x9a7   : > { %p1682_p10 = pnand %p1681_p13, %p2219_p12  ;;  %s1686_s14 = scalar_lea.vmem %s1685_s11, 256 }
 0x9a8   : > { %p1687_p3 = scmp.lt.s32.totalorder %s2119_s13, %s1685_s11  ;;  %p1688_p2 = scmp.lt.s32.totalorder %s1686_s14, %s1680_s18 }
 0x9a9   : > { %p1683_p0 = pneg %p1682_p10 }
 0x9aa   : > { %p1689_p9 = por %p1688_p2, %p1687_p3 }
 0x9ac   : > { %p1690_p1 = pnand %p1689_p9, %p1683_p0 }
 0x9ae   : > { %1693 = shalt.err (!%p1690_p1)
}
 0x9af   : > { %s1694_s16 = scalar_lea.hbm %s2116_s19, 128  ;;  %s1698_s9 = scalar_lea.hbm %s2197_s8, 256 }
 0x9b0   : > { %p1695_p6 = scmp.ne.s32.totalorder %s2116_s19, %s1694_s16  ;;  %p1699_p8 = scmp.lt.s32.totalorder %s2116_s19, %s2197_s8 }
 0x9b1   : > { %p1700_p5 = scmp.lt.s32.totalorder %s1698_s9, %s1694_s16 }
 0x9b2   : > { %p1696_p7 = pnand %p1695_p6, %p2219_p12 }
 0x9b3   : > { %p1701_p11 = por %p1700_p5, %p1699_p8 }
 0x9b4   : > { %p1697_p4 = pneg %p1696_p7 }
 0x9b6   : > { %p1702_p13 = pnand %p1701_p11, %p1697_p4 }
 0x9b8   : > { %1705 = shalt.err (!%p1702_p13)
}
 0x9b9   : > { %s1782_s21 = smov 4   ;;  %s2220_s20 = smov 64  }
 0x9ba   : > { %1429 = dma.vmem_to_hbm [thread:$0]  (%p2219_p12), %s2119_s13, 128, %s2116_s19, %s1114_s10, %s2220_s20, %s2220_s20, %s1782_s21  }
 0x9bb PF: > { %s1158_s18 = sand.u32 1, %s1744_s27   ;;  %p2221_p10 = scmp.ne.s32.totalorder %s2206_s12, 0 }
 0x9bc   : > { %p2222_p0 = scmp.ge.s32.totalorder %s1756_s30, 2  ;;  %s1159_s25 = scalar_lea.sflag [#allocation4], %s1158_s18 }
 0x9be   : > { %p1447_p3 = pnand %p2222_p0, %p2221_p10 }
 0x9c0   : > { %p1448_p2 = pneg %p1447_p3 }
 0x9c2   : > { %1735 = dma.done.wait (%p1448_p2), %s1159_s25, 256  }
 0x9c3   : > { %1737 = vsyncadd (%p1448_p2), %s1159_s25, 4294967040  ;;  %s1168_s23 = scalar_lea.sflag [#allocation12], %s1158_s18 }
 0x9c4   : > { %1739 = dma.done.wait (%p1448_p2), %s1168_s23, 128  }
 0x9c5   : > { %1741 = vsyncadd (%p1448_p2), %s1168_s23, 4294967168  ;;  %p27_p12 = scmp.ge.s32.totalorder %s1905_s17, 4   ;;  %s2223_s27 = smov %s1748_s28 }
 0x9c6   : > { %s2224_s28 = smov %s1752_s29  ;;  %s2225_s29 = smov %s1915_s22 }
 0x9c7   : > { %s2226_s30 = smov %s1905_s17  ;;  %29 = sbr.rel (!%p27_p12) target bundleno = 12 (0xc), region = 123 }
 0x9cc   :  { %1173 = vsyncpa [#allocation3], 1 }
 0x9cd   :  { %1175 = vsyncpa [#allocation3 + $0x1], 1 }
 0x9ce   :  { %1176 = vsyncpa [#allocation8], 1 }
 0x9cf   :  { %1177 = vsyncpa [#allocation4], 1 }
 0x9d0   :  { %1179 = vsyncpa [#allocation4 + $0x1], 1 }
 0x9d1   :  { %1180 = vsyncpa [#allocation12], 1 }
 0x9d2   :  { %1182 = vsyncpa [#allocation12 + $0x1], 1 }
 0x9d3   :  { %1183 = vsyncpa [#allocation5], 1 }
 0x9d4   :  { %1185 = vsyncpa [#allocation5 + $0x1], 1 }

</bundles_post_ra>
